<compile_context>
chip_gen: v6e
topology: v6e:2x2x1
jax: 0.10.0
libtpu: 0.0.40
codegen_flags: <defaults>
</compile_context>

<pallas_src>
import functools
import math

import jax
import jax.numpy as jnp
from jax import lax
from jax.experimental import pallas as pl
from jax.experimental.pallas import tpu as pltpu


def _attn_kernel(*refs, scale, dropout_p):
    if dropout_p > 0.0:
        seed_ref, q_ref, k_ref, v_ref, o_ref = refs
    else:
        q_ref, k_ref, v_ref, o_ref = refs

    q = q_ref[...]            # (Sq, D)  input dtype (MXU-friendly; no f32 upcast)
    k = k_ref[...]            # (Sk, D)
    v = v_ref[...]            # (Sk, Dv)

    # scores = q @ k^T, expressed as a contraction over D (no explicit .T /
    # XLU re-layout); accumulate in f32 on the MXU, then fold in the
    # compile-time scale on the f32 scores.
    s = lax.dot_general(
        q, k,
        dimension_numbers=(((1,), (1,)), ((), ())),
        preferred_element_type=jnp.float32) * scale          # (Sq, Sk) f32

    # Numerically stable softmax numerator; normalization deferred (exact --
    # the per-row 1/denom commutes with the elementwise dropout mask/scale).
    s = s - jnp.max(s, axis=-1, keepdims=True)
    p = jnp.exp(s)
    denom = jnp.sum(p, axis=-1, keepdims=True)               # (Sq, 1)

    if dropout_p > 0.0:
        # Inverted dropout (nn.Dropout train-mode semantics; PRNG stream
        # obviously differs from torch's). Per-batch offset keeps masks
        # independent across grid steps.
        pltpu.prng_seed(seed_ref[0] + pl.program_id(0))
        bits = pltpu.prng_random_bits(p.shape)                # uint32
        thr = jnp.uint32(min(int(dropout_p * (2.0 ** 32)), 2 ** 32 - 1))
        keep = bits >= thr
        p = jnp.where(keep, p * (1.0 / (1.0 - dropout_p)), 0.0)

    out = jnp.dot(p.astype(v.dtype), v,
                  preferred_element_type=jnp.float32)         # (Sq, Dv) f32

    # Deferred softmax normalization (exact divide).
    o_ref[...] = (out / denom).astype(o_ref.dtype)


def sdpa_pallas(query, key, value, scale_factor, *, dropout_p=0.0, seed=0):
    """query (B,Sq,D), key (B,Sk,D), value (B,Sk,Dv) -> (B,Sq,Dv)."""
    B, Sq, D = query.shape
    Bk, Sk, Dk = key.shape
    Bv, Skv, Dv = value.shape
    assert B == Bk == Bv and D == Dk and Sk == Skv
    if not (0.0 <= dropout_p < 1.0):
        raise ValueError("dropout_p must be in [0, 1) (p == 1 is degenerate).")

    out_dtype = query.dtype
    use_dropout = dropout_p > 0.0

    # Blocks keep the true (unpadded) trailing dims; the batch dim is squeezed
    # out so the kernel sees clean 2-D tiles.
    def idx(b, *prefetch_refs):
        return (b, 0, 0)

    kernel = functools.partial(
        _attn_kernel, scale=float(scale_factor), dropout_p=float(dropout_p))

    grid_spec = pltpu.PrefetchScalarGridSpec(
        num_scalar_prefetch=1 if use_dropout else 0,   # seed only when needed
        grid=(B,),                                     # one batch per grid step
        in_specs=[
            pl.BlockSpec((None, Sq, D), idx),
            pl.BlockSpec((None, Sk, D), idx),
            pl.BlockSpec((None, Sk, Dv), idx),
        ],
        out_specs=pl.BlockSpec((None, Sq, Dv), idx),
    )

    args = (query, key, value)
    if use_dropout:
        args = (jnp.asarray([seed], dtype=jnp.int32),) + args

    return pl.pallas_call(
        kernel,
        out_shape=jax.ShapeDtypeStruct((B, Sq, Dv), out_dtype),
        grid_spec=grid_spec,
        compiler_params=pltpu.CompilerParams(
            dimension_semantics=("parallel",)),        # megacore over batch (v7x)
    )(*args)


def sdpa_ref(query, key, value, scale_factor):
    qk = jnp.einsum("bqd,bkd->bqk", query, key) * scale_factor
    p = jax.nn.softmax(qk, axis=-1)
    return jnp.einsum("bqk,bkd->bqd", p, value)


if __name__ == "__main__":
    # Shapes implied by the module's example tensors: batch=4, seq=5, dim=15.
    # (The snippet's value tensor (4,6,15) is shape-inconsistent with the
    #  softmax@value matmul; we use the consistent (4,5,15).)
    B, Sq, Sk, D, Dv = 4, 5, 5, 15, 15
    k0, k1, k2 = jax.random.split(jax.random.PRNGKey(0), 3)
    query = jax.random.normal(k0, (B, Sq, D), dtype=jnp.float32)
    key = jax.random.normal(k1, (B, Sk, D), dtype=jnp.float32)
    value = jax.random.normal(k2, (B, Sk, Dv), dtype=jnp.float32)
    scale_factor = 1.0 / math.sqrt(D)

    # dropout_p is undefined in the reference snippet; use 0.0 (== eval mode)
    # so the forward is deterministic and directly comparable to the reference.
    out = sdpa_pallas(query, key, value, scale_factor, dropout_p=0.0)
    out = jax.block_until_ready(out)

    ref = sdpa_ref(query, key, value, scale_factor)
    assert out.shape == (B, Sq, Dv)
    assert jnp.allclose(out, ref, atol=1e-5, rtol=1e-5), "mismatch vs reference"

    print("KERNEL_OK")
</pallas_src>

<mosaic_0001>
module attributes {stable_mosaic.version = 11 : i64} {
  func.func @_attn_kernel(%arg0: i32, %arg1: memref<1x5x15xf32, #tpu.memory_space<vmem>>, %arg2: memref<1x5x15xf32, #tpu.memory_space<vmem>>, %arg3: memref<1x5x15xf32, #tpu.memory_space<vmem>>, %arg4: memref<1x5x15xf32, #tpu.memory_space<vmem>>) attributes {dimension_semantics = [#tpu.dimension_semantics<parallel>], iteration_bounds = array<i64: 4>, scalar_prefetch = 0 : i64, scratch_operands = 0 : i64, tpu.core_type = #tpu.core_type<tc>, window_params = [{transform_indices = @transform_0, window_bounds = array<i64: 1, 5, 15>}, {transform_indices = @transform_1, window_bounds = array<i64: 1, 5, 15>}, {transform_indices = @transform_2, window_bounds = array<i64: 1, 5, 15>}, {transform_indices = @transform_3, window_bounds = array<i64: 1, 5, 15>}]} {
    %c0 = arith.constant 0 : index
    %c0_0 = arith.constant 0 : index
    %c0_1 = arith.constant 0 : index
    %0 = vector.load %arg1[%c0, %c0_0, %c0_1] : memref<1x5x15xf32, #tpu.memory_space<vmem>>, vector<1x5x15xf32>
    %1 = vector.shape_cast %0 : vector<1x5x15xf32> to vector<5x15xf32>
    %c0_2 = arith.constant 0 : index
    %c0_3 = arith.constant 0 : index
    %c0_4 = arith.constant 0 : index
    %2 = vector.load %arg2[%c0_2, %c0_3, %c0_4] : memref<1x5x15xf32, #tpu.memory_space<vmem>>, vector<1x5x15xf32>
    %3 = vector.shape_cast %2 : vector<1x5x15xf32> to vector<5x15xf32>
    %c0_5 = arith.constant 0 : index
    %c0_6 = arith.constant 0 : index
    %c0_7 = arith.constant 0 : index
    %4 = vector.load %arg3[%c0_5, %c0_6, %c0_7] : memref<1x5x15xf32, #tpu.memory_space<vmem>>, vector<1x5x15xf32>
    %5 = vector.shape_cast %4 : vector<1x5x15xf32> to vector<5x15xf32>
    %cst = arith.constant dense<0.000000e+00> : vector<5x5xf32>
    %6 = tpu.matmul %1, %3, %cst {dimension_numbers = #tpu.dot_dimension_numbers<[1], [1], [0], [0], [0, 0, 1, 0], [], []>} : vector<5x15xf32>, vector<5x15xf32>, vector<5x5xf32> -> vector<5x5xf32>
    %cst_8 = arith.constant 0.258198887 : f32
    %7 = vector.broadcast %cst_8 : f32 to vector<5x5xf32>
    %8 = arith.mulf %6, %7 : vector<5x5xf32>
    %cst_9 = arith.constant dense<0xFF800000> : vector<5xf32>
    %9 = vector.multi_reduction <maximumf>, %8, %cst_9 [1] : vector<5x5xf32> to vector<5xf32>
    %10 = vector.shape_cast %9 : vector<5xf32> to vector<5x1xf32>
    %11 = vector.broadcast %10 : vector<5x1xf32> to vector<5x5xf32>
    %12 = arith.subf %8, %11 : vector<5x5xf32>
    %13 = math.exp %12 : vector<5x5xf32>
    %cst_10 = arith.constant dense<0.000000e+00> : vector<5xf32>
    %14 = vector.multi_reduction <add>, %13, %cst_10 [1] : vector<5x5xf32> to vector<5xf32>
    %15 = vector.shape_cast %14 : vector<5xf32> to vector<5x1xf32>
    %cst_11 = arith.constant dense<0.000000e+00> : vector<5x15xf32>
    %16 = tpu.matmul %13, %5, %cst_11 {dimension_numbers = #tpu.dot_dimension_numbers<[1], [0], [0], [1], [0, 0, 1, 1], [], []>} : vector<5x5xf32>, vector<5x15xf32>, vector<5x15xf32> -> vector<5x15xf32>
    %17 = vector.broadcast %15 : vector<5x1xf32> to vector<5x15xf32>
    %18 = arith.divf %16, %17 : vector<5x15xf32>
    %c0_12 = arith.constant 0 : index
    %c0_13 = arith.constant 0 : index
    %c0_14 = arith.constant 0 : index
    %19 = vector.load %arg4[%c0_12, %c0_13, %c0_14] : memref<1x5x15xf32, #tpu.memory_space<vmem>>, vector<1x5x15xf32>
    %20 = vector.shape_cast %19 : vector<1x5x15xf32> to vector<5x15xf32>
    %21 = vector.shape_cast %18 : vector<5x15xf32> to vector<1x5x15xf32>
    tpu.vector_store %arg4[%c0_12, %c0_13, %c0_14], %21 {strides = array<i32>} : memref<1x5x15xf32, #tpu.memory_space<vmem>>, vector<1x5x15xf32>,
    return
  }
  func.func @transform_0(%arg0: i32) -> (i32, i32, i32) {
    %c0_i32 = arith.constant 0 : i32
    %c0_i32_0 = arith.constant 0 : i32
    %c0_i32_1 = arith.constant 0 : i32
    return %arg0, %c0_i32, %c0_i32_0 : i32, i32, i32
  }
  func.func @transform_1(%arg0: i32) -> (i32, i32, i32) {
    %c0_i32 = arith.constant 0 : i32
    %c0_i32_0 = arith.constant 0 : i32
    %c0_i32_1 = arith.constant 0 : i32
    return %arg0, %c0_i32, %c0_i32_0 : i32, i32, i32
  }
  func.func @transform_2(%arg0: i32) -> (i32, i32, i32) {
    %c0_i32 = arith.constant 0 : i32
    %c0_i32_0 = arith.constant 0 : i32
    %c0_i32_1 = arith.constant 0 : i32
    return %arg0, %c0_i32, %c0_i32_0 : i32, i32, i32
  }
  func.func @transform_3(%arg0: i32) -> (i32, i32, i32) {
    %c0_i32 = arith.constant 0 : i32
    %c0_i32_0 = arith.constant 0 : i32
    %c0_i32_1 = arith.constant 0 : i32
    return %arg0, %c0_i32, %c0_i32_0 : i32, i32, i32
  }
}

</mosaic_0001>

<bundles_post_ra>
// kernel: tpu_custom_call.1
= control target key start
LH: loop header
LB: loop body
LE: loop exit
PB: predicated region body
PF: predicated region fallthrough
CT: control target
= control target key end

     0   :  { %s523_s12 = smov 0   ;;  %s554_s0 = inlined_call_operand.vmem [shape: f32[4,5,15], index: 0, kind: input, shape index: {}]   ;;  %s555_s1 = inlined_call_operand.vmem [shape: f32[4,5,15], index: 1, kind: input, shape index: {}]   ;;  %s556_s2 = inlined_call_operand.vmem [shape: f32[4,5,15], index: 2, kind: input, shape index: {}]   ;;  %s557_s3 = inlined_call_operand.vmem [shape: f32[4,5,15], index: 3, kind: output, shape index: {}]  }
   0x1 LB: > { %s450_s13 = sadd.s32 4294967295, %s499_s12   ;;  %p454_p0 = scmp.ge.s32.totalorder %s499_s12, 1  ;;  %s499_s12 = sphi %s523_s12, %s13_s12  }
   0x2   : > { %p154_p1 = scmp.lt.s32.totalorder %s499_s12, 5 }
   0x4   : > { %p155_p2 = pnand %p454_p0, %p154_p1 }
   0x5   : > { %p184_p3 = scmp.lt.s32.totalorder (!%p155_p2), %s450_s13, 3 }
   0x6   : > { %158 = sbr.rel (%p155_p2) target bundleno = 566 (0x236), region = 32 }
   0xb   : > { %v501_v0 = vmov 0.0   ;;  %vm502_vm0 = vmmov 0   ;;  %s559_s13 = smov (!%p184_p3, %s450_s13), 3  ;;  %vm203_vm1 = vcmask 121856   ;;  %vm281_vm2 = vcmask 36864  }
   0xc   : > { %469 = vmatprep.subr.mxu0 %v501_v0  ;;  %471 = vmatprep.mubr.msk.f32.mxu0 %vm502_vm0, %v501_v0  ;;  %s531_s14 = sshll.u32 %s559_s13, 3  ;;  %vm295_vm3 = vcmask 1044480   ;;  %vm291_vm4 = vcmask 39936   ;;  %vm371_vm5 = vcmask 118784  }
   0xd   : > { %474 = vmatprep.subr.mxu1 %v501_v0  ;;  %476 = vmatprep.mubr.msk.f32.mxu1 %vm502_vm0, %v501_v0  ;;  %s191_s17 = scalar_lea.vmem %s555_s1, %s531_s14  ;;  %s187_s20 = scalar_lea.vmem %s554_s0, %s531_s14 }
   0xe   : > { %v201_v1 = vld [vmem:[%s191_s17] sm:$0x1f]  ;;  %s195_s23 = scalar_lea.vmem %s556_s2, %s531_s14  ;;  %s199_s26 = scalar_lea.vmem %s557_s3, %s531_s14 }
   0xf   : > { %470 = vmatpush3.xpose.msk.msra.mxu0 %vm203_vm1, %v201_v1  ;;  %v200_v2 = vld [vmem:[%s187_s20] sm:$0x1f] }
  0x10   : > { %v202_v7 = vld [vmem:[%s195_s23] sm:$0x1f] }
  0x11   : > { %475 = vmatpush3.msk.msra.mxu1 %vm295_vm3, %v202_v7 }
  0x12   : > { %472 = vmatmul.mubr.msk.f32.vlgmr.msra.gmra.mxu0 %vm203_vm1, %v200_v2 }
  0xd2   : > { %v276_v3 = vpop.f32.mrf.mxu0 }
  0xd3   : > { %v280_v4 = vmul.f32 0.2581989, %v276_v3 }
  0xd4   : > { %v473_v5 = vpop.f32.mrf.mxu0 }
  0xd5   : > { %v282_v6 = vsel %vm281_vm2, %v280_v4, -inf }
  0xd6   : > { %283 = vmax.xlane.f32.xlu0 %v282_v6 }
 0x15f   : > { %v284_v8 = vpop.xlane.xlu0 %283 }
 0x160   : > { %v285_v9 = vsub.f32 %v280_v4, %v284_v8 }
 0x162   : > { %v286_v10 = vmul.f32 1.442695, %v285_v9 }
 0x164   : > { %489 = vpow2.f32 %v286_v10 }
 0x171   : > { %v490_v11 = vpop.eup %489 }
 0x172   : > { %477 = vmatmul.mubr.msk.f32.vlgmr.msra.gmra.mxu1 %vm291_vm4, %v490_v11  ;;  %v288_v12 = vsel %vm281_vm2, %v490_v11, 0.0 }
 0x173   : > { %289 = vadd.xlane.f32.xlu0 %v288_v12 }
 0x1fc   : > { %v290_v13 = vpop.xlane.xlu0 %289 }
 0x1fd   : > { %491 = vrcp.f32 %v290_v13 }
 0x20a   : > { %v492_v14 = vpop.eup %491 }
 0x232   : > { %v365_v15 = vpop.f32.mrf.mxu1 }
 0x233   : > { %v370_v16 = vmul.f32 %v492_v14, %v365_v15 }
 0x234   : > { %v478_v17 = vpop.f32.mrf.mxu1 }
 0x235   : > { %372 = vst.msk [vmem:[%s199_s26] sm:$0x1f] %vm371_vm5, %v370_v16 }
 0x236 PF: > { %s13_s12 = sadd.s32 1, %s499_s12  }
 0x237   : > { %p10_p4 = scmp.ge.s32.totalorder %s13_s12, 6  }
 0x239   :  { %12 = sbr.rel (!%p10_p4) target bundleno = 1 (0x1), region = 68 }

</bundles_post_ra>
